<compile_context>
chip_gen: v5e
topology: v5e:2x2
jax: 0.10.0
libtpu: 0.0.40
codegen_flags: <defaults>
</compile_context>

<pallas_src>
import math
import functools

import jax
import jax.numpy as jnp
from jax.experimental import pallas as pl
from jax.experimental.pallas import tpu as pltpu


_NEG_INF = -1e30  # finite mask value; avoids inf-inf -> NaN in online softmax


def _pick_tile(t: int) -> int:
    """Largest nice tile dividing T (keeps (8,128) block constraint; prefers
    MXU-friendly >=256 tiles when T allows)."""
    for cand in (512, 256, 128, 64, 32, 16, 8):
        if t % cand == 0:
            return cand
    return t  # block equals the full dim -> always legal


# ---------------------------------------------------------------------------
# Kernel 1: QKV projection at true (unpadded) widths.  Scale already folded
# into Wq / bq by the wrapper, so q comes out pre-scaled.
# ---------------------------------------------------------------------------
def _qkv_proj_kernel(x_ref, wq_ref, bq_ref, wk_ref, bk_ref, wv_ref, bv_ref,
                     q_ref, k_ref, v_ref):
    x = x_ref[0]                                            # (TILE, D)
    q = jnp.dot(x, wq_ref[...], preferred_element_type=jnp.float32) + bq_ref[...]
    k = jnp.dot(x, wk_ref[...], preferred_element_type=jnp.float32) + bk_ref[...]
    v = jnp.dot(x, wv_ref[...], preferred_element_type=jnp.float32) + bv_ref[...]
    q_ref[0] = q.astype(q_ref.dtype)
    k_ref[0] = k.astype(k_ref.dtype)
    v_ref[0] = v.astype(v_ref.dtype)


# ---------------------------------------------------------------------------
# Kernel 2: flash attention over a flattened lower-triangular (qi, ki) grid.
#   - init running stats at ki == 0
#   - off-diagonal tiles: unmasked online-softmax update
#   - diagonal tile (ki == qi): masked update + finalize/normalize/write
# ---------------------------------------------------------------------------
def _flash_attn_kernel(qtbl_ref, ktbl_ref,          # scalar-prefetch (SMEM)
                       q_ref, k_ref, v_ref, o_ref,  # tiles
                       m_sc, l_sc, acc_sc,          # VMEM scratch
                       *, tq, tk):
    step = pl.program_id(1)
    qi = qtbl_ref[step]
    ki = ktbl_ref[step]

    @pl.when(ki == 0)
    def _init():
        m_sc[...] = jnp.full_like(m_sc, -jnp.inf)
        l_sc[...] = jnp.zeros_like(l_sc)
        acc_sc[...] = jnp.zeros_like(acc_sc)

    q = q_ref[0]                                            # (tq, H), pre-scaled
    k = k_ref[0]                                            # (tk, H)
    v = v_ref[0]                                            # (tk, V)
    # Contract last dims directly (no explicit k.T / XLU transpose).
    scores = jax.lax.dot_general(q, k, (((1,), (1,)), ((), ())),
                                 preferred_element_type=jnp.float32)  # (tq, tk)

    def _accumulate(s):
        m_prev = m_sc[...]
        m_new = jnp.maximum(m_prev, jnp.max(s, axis=-1, keepdims=True))
        alpha = jnp.exp(m_prev - m_new)
        p = jnp.exp(s - m_new)
        l_sc[...] = alpha * l_sc[...] + jnp.sum(p, axis=-1, keepdims=True)
        acc_sc[...] = alpha * acc_sc[...] + jnp.dot(
            p.astype(v.dtype), v, preferred_element_type=jnp.float32)
        m_sc[...] = m_new

    @pl.when(ki != qi)
    def _off_diag():
        _accumulate(scores)                                 # fully unmasked tile

    @pl.when(ki == qi)
    def _diag_and_finalize():
        # tq == tk and tiles are diagonal-aligned -> local indices suffice.
        row = jax.lax.broadcasted_iota(jnp.int32, (tq, tk), 0)
        col = jax.lax.broadcasted_iota(jnp.int32, (tq, tk), 1)
        _accumulate(jnp.where(col > row, _NEG_INF, scores))
        inv_l = pl.reciprocal(l_sc[...], approx=True)       # EUP slot, ~free
        o_ref[0] = (acc_sc[...] * inv_l).astype(o_ref.dtype)
        # TODO(synk): training-mode dropout on attention probs not implemented.


# ---------------------------------------------------------------------------
# Wrapper
# ---------------------------------------------------------------------------
def attention_forward(x, wq, bq, wk, bk, wv, bv, *, compute_dtype=jnp.bfloat16):
    """x: (B, T, D) f32.  Weights (D, H)/(D, V) (pre-transposed), biases (1, .).

    compute_dtype=bf16 feeds the MXU bf16 inputs on all generations (v5e's MXU
    is bf16-native); softmax state / accumulators stay f32.
    """
    B, T, D = x.shape
    H = wq.shape[1]
    V = wv.shape[1]
    scale = float(math.pow(H, -0.5))

    # Fold the score scale into the query projection (exact for power-of-two
    # scales).  In a real deployment precompute these casts once, outside the
    # per-call path; under jit with constant weights XLA folds them anyway.
    wq_s = (wq * scale).astype(compute_dtype)
    bq_s = (bq * scale).astype(jnp.float32)
    wk_c = wk.astype(compute_dtype)
    wv_c = wv.astype(compute_dtype)
    bk_c = bk.astype(jnp.float32)
    bv_c = bv.astype(jnp.float32)
    x_c = x.astype(compute_dtype)

    TILE = _pick_tile(T)        # tq == tk (keeps diag-only masking valid)
    nq = T // TILE

    # ---- Kernel 1: QKV projection (unpadded widths) ---------------------------
    q, k, v = pl.pallas_call(
        _qkv_proj_kernel,
        out_shape=(
            jax.ShapeDtypeStruct((B, T, H), compute_dtype),
            jax.ShapeDtypeStruct((B, T, H), compute_dtype),
            jax.ShapeDtypeStruct((B, T, V), compute_dtype),
        ),
        grid_spec=pltpu.PrefetchScalarGridSpec(
            num_scalar_prefetch=0,
            grid=(B, nq),
            in_specs=[
                pl.BlockSpec((1, TILE, D), lambda b, i: (b, i, 0)),   # x tile
                pl.BlockSpec((D, H), lambda b, i: (0, 0)),            # Wq*scale
                pl.BlockSpec((1, H), lambda b, i: (0, 0)),            # bq*scale
                pl.BlockSpec((D, H), lambda b, i: (0, 0)),            # Wk
                pl.BlockSpec((1, H), lambda b, i: (0, 0)),            # bk
                pl.BlockSpec((D, V), lambda b, i: (0, 0)),            # Wv
                pl.BlockSpec((1, V), lambda b, i: (0, 0)),            # bv
            ],
            out_specs=[
                pl.BlockSpec((1, TILE, H), lambda b, i: (b, i, 0)),   # q (pre-scaled)
                pl.BlockSpec((1, TILE, H), lambda b, i: (b, i, 0)),   # k
                pl.BlockSpec((1, TILE, V), lambda b, i: (b, i, 0)),   # v
            ],
        ),
        compiler_params=pltpu.CompilerParams(
            dimension_semantics=("parallel", "parallel")),
    )(x_c, wq_s, bq_s, wk_c, bk_c, wv_c, bv_c)

    # ---- Kernel 2: flash attention over a lower-triangular step table ---------
    # step -> (qi, ki) with ki <= qi; only contributing tiles are ever visited
    # (no wasted grid steps, no wasted K/V DMAs for the causal upper triangle).
    qi_idx, ki_idx = [], []
    for qi in range(nq):
        for ki in range(qi + 1):
            qi_idx.append(qi)
            ki_idx.append(ki)
    q_tbl = jnp.asarray(qi_idx, dtype=jnp.int32)
    k_tbl = jnp.asarray(ki_idx, dtype=jnp.int32)
    n_steps = len(qi_idx)

    out = pl.pallas_call(
        functools.partial(_flash_attn_kernel, tq=TILE, tk=TILE),
        out_shape=jax.ShapeDtypeStruct((B, T, V), jnp.float32),
        grid_spec=pltpu.PrefetchScalarGridSpec(
            num_scalar_prefetch=2,
            grid=(B, n_steps),
            in_specs=[
                pl.BlockSpec((1, TILE, H), lambda b, s, qt, kt: (b, qt[s], 0)),  # q
                pl.BlockSpec((1, TILE, H), lambda b, s, qt, kt: (b, kt[s], 0)),  # k
                pl.BlockSpec((1, TILE, V), lambda b, s, qt, kt: (b, kt[s], 0)),  # v
            ],
            out_specs=pl.BlockSpec((1, TILE, V), lambda b, s, qt, kt: (b, qt[s], 0)),
            scratch_shapes=[
                pltpu.VMEM((TILE, 1), jnp.float32),    # running max
                pltpu.VMEM((TILE, 1), jnp.float32),    # running sum
                pltpu.VMEM((TILE, V), jnp.float32),    # output accumulator
            ],
        ),
        compiler_params=pltpu.CompilerParams(
            dimension_semantics=("parallel", "arbitrary")),
    )(q_tbl, k_tbl, q, k, v)

    return out


# ---------------------------------------------------------------------------
# Pure-JAX reference (mirrors the PyTorch module forward, eval mode)
# ---------------------------------------------------------------------------
def _reference(x, wq, bq, wk, bk, wv, bv, head_dim):
    q = x @ wq + bq
    k = x @ wk + bk
    v = x @ wv + bv
    s = jnp.einsum('bsh,bth->bst', q, k) * math.pow(head_dim, -0.5)
    T = x.shape[1]
    mask = jnp.triu(jnp.ones((T, T), dtype=bool), k=1)
    s = jnp.where(mask[None], -jnp.inf, s)
    p = jax.nn.softmax(s, axis=-1)
    return jnp.einsum('bst,btv->bsv', p, v)


if __name__ == "__main__":
    # Small synthetic config consistent with the module.
    B, T = 2, 8                   # batch, sequence length (<= MAX_CONTEXT)
    MODEL_DIM, HEAD_DIM, VALUE_DIM = 32, 16, 16

    key = jax.random.PRNGKey(0)
    kx, kwq, kbq, kwk, kbk, kwv, kbv = jax.random.split(key, 7)

    x = jax.random.normal(kx, (B, T, MODEL_DIM), dtype=jnp.float32)

    # nn.Linear stores weight (out, in); we store the transposed (in, out)
    # layout used directly by the kernels.
    def lin_init(kw, kb, fan_in, fan_out):
        bound = 1.0 / math.sqrt(fan_in)
        w = jax.random.uniform(kw, (fan_in, fan_out), jnp.float32, -bound, bound)
        b = jax.random.uniform(kb, (1, fan_out), jnp.float32, -bound, bound)
        return w, b

    wq, bq = lin_init(kwq, kbq, MODEL_DIM, HEAD_DIM)
    wk, bk = lin_init(kwk, kbk, MODEL_DIM, HEAD_DIM)
    wv, bv = lin_init(kwv, kbv, MODEL_DIM, VALUE_DIM)

    ref = _reference(x, wq, bq, wk, bk, wv, bv, HEAD_DIM)

    # f32 MXU-input path (tight tolerance check).
    out_f32 = attention_forward(x, wq, bq, wk, bk, wv, bv, compute_dtype=jnp.float32)
    out_f32 = jax.block_until_ready(out_f32)
    assert out_f32.shape == (B, T, VALUE_DIM)
    assert jnp.allclose(out_f32, ref, atol=2e-3, rtol=2e-3), "f32 mismatch vs reference"

    # Default bf16 MXU-input path (all generations); f32 accumulation.
    out_bf16 = attention_forward(x, wq, bq, wk, bk, wv, bv)
    out_bf16 = jax.block_until_ready(out_bf16)
    assert out_bf16.shape == (B, T, VALUE_DIM)
    assert jnp.allclose(out_bf16, ref, atol=5e-2, rtol=5e-2), "bf16 mismatch vs reference"

    print("KERNEL_OK")
</pallas_src>

<mosaic_0001>
module attributes {stable_mosaic.version = 11 : i64} {
  func.func @_qkv_proj_kernel(%arg0: i32, %arg1: i32, %arg2: memref<1x8x32xf32, #tpu.memory_space<vmem>>, %arg3: memref<32x16xf32, #tpu.memory_space<vmem>>, %arg4: memref<1x16xf32, #tpu.memory_space<vmem>>, %arg5: memref<32x16xf32, #tpu.memory_space<vmem>>, %arg6: memref<1x16xf32, #tpu.memory_space<vmem>>, %arg7: memref<32x16xf32, #tpu.memory_space<vmem>>, %arg8: memref<1x16xf32, #tpu.memory_space<vmem>>, %arg9: memref<1x8x16xf32, #tpu.memory_space<vmem>>, %arg10: memref<1x8x16xf32, #tpu.memory_space<vmem>>, %arg11: memref<1x8x16xf32, #tpu.memory_space<vmem>>) attributes {dimension_semantics = [#tpu.dimension_semantics<parallel>, #tpu.dimension_semantics<parallel>], iteration_bounds = array<i64: 2, 1>, scalar_prefetch = 0 : i64, scratch_operands = 0 : i64, tpu.core_type = #tpu.core_type<tc>, window_params = [{transform_indices = @transform_0, window_bounds = array<i64: 1, 8, 32>}, {pipeline_mode = #tpu.pipeline_mode<synchronous>, transform_indices = @transform_1, window_bounds = array<i64: 32, 16>}, {pipeline_mode = #tpu.pipeline_mode<synchronous>, transform_indices = @transform_2, window_bounds = array<i64: 1, 16>}, {pipeline_mode = #tpu.pipeline_mode<synchronous>, transform_indices = @transform_3, window_bounds = array<i64: 32, 16>}, {pipeline_mode = #tpu.pipeline_mode<synchronous>, transform_indices = @transform_4, window_bounds = array<i64: 1, 16>}, {pipeline_mode = #tpu.pipeline_mode<synchronous>, transform_indices = @transform_5, window_bounds = array<i64: 32, 16>}, {pipeline_mode = #tpu.pipeline_mode<synchronous>, transform_indices = @transform_6, window_bounds = array<i64: 1, 16>}, {transform_indices = @transform_7, window_bounds = array<i64: 1, 8, 16>}, {transform_indices = @transform_8, window_bounds = array<i64: 1, 8, 16>}, {transform_indices = @transform_9, window_bounds = array<i64: 1, 8, 16>}]} {
    %c0 = arith.constant 0 : index
    %c0_0 = arith.constant 0 : index
    %c0_1 = arith.constant 0 : index
    %0 = vector.load %arg2[%c0, %c0_0, %c0_1] : memref<1x8x32xf32, #tpu.memory_space<vmem>>, vector<1x8x32xf32>
    %1 = vector.shape_cast %0 : vector<1x8x32xf32> to vector<8x32xf32>
    %c0_2 = arith.constant 0 : index
    %c0_3 = arith.constant 0 : index
    %2 = vector.load %arg3[%c0_2, %c0_3] : memref<32x16xf32, #tpu.memory_space<vmem>>, vector<32x16xf32>
    %cst = arith.constant dense<0.000000e+00> : vector<8x16xf32>
    %3 = tpu.matmul %1, %2, %cst {dimension_numbers = #tpu.dot_dimension_numbers<[1], [0], [0], [1], [0, 0, 1, 1], [], []>} : vector<8x32xf32>, vector<32x16xf32>, vector<8x16xf32> -> vector<8x16xf32>
    %c0_4 = arith.constant 0 : index
    %c0_5 = arith.constant 0 : index
    %4 = vector.load %arg4[%c0_4, %c0_5] : memref<1x16xf32, #tpu.memory_space<vmem>>, vector<1x16xf32>
    %5 = vector.broadcast %4 : vector<1x16xf32> to vector<8x16xf32>
    %6 = arith.addf %3, %5 : vector<8x16xf32>
    %c0_6 = arith.constant 0 : index
    %c0_7 = arith.constant 0 : index
    %7 = vector.load %arg5[%c0_6, %c0_7] : memref<32x16xf32, #tpu.memory_space<vmem>>, vector<32x16xf32>
    %cst_8 = arith.constant dense<0.000000e+00> : vector<8x16xf32>
    %8 = tpu.matmul %1, %7, %cst_8 {dimension_numbers = #tpu.dot_dimension_numbers<[1], [0], [0], [1], [0, 0, 1, 1], [], []>} : vector<8x32xf32>, vector<32x16xf32>, vector<8x16xf32> -> vector<8x16xf32>
    %c0_9 = arith.constant 0 : index
    %c0_10 = arith.constant 0 : index
    %9 = vector.load %arg6[%c0_9, %c0_10] : memref<1x16xf32, #tpu.memory_space<vmem>>, vector<1x16xf32>
    %10 = vector.broadcast %9 : vector<1x16xf32> to vector<8x16xf32>
    %11 = arith.addf %8, %10 : vector<8x16xf32>
    %c0_11 = arith.constant 0 : index
    %c0_12 = arith.constant 0 : index
    %12 = vector.load %arg7[%c0_11, %c0_12] : memref<32x16xf32, #tpu.memory_space<vmem>>, vector<32x16xf32>
    %cst_13 = arith.constant dense<0.000000e+00> : vector<8x16xf32>
    %13 = tpu.matmul %1, %12, %cst_13 {dimension_numbers = #tpu.dot_dimension_numbers<[1], [0], [0], [1], [0, 0, 1, 1], [], []>} : vector<8x32xf32>, vector<32x16xf32>, vector<8x16xf32> -> vector<8x16xf32>
    %c0_14 = arith.constant 0 : index
    %c0_15 = arith.constant 0 : index
    %14 = vector.load %arg8[%c0_14, %c0_15] : memref<1x16xf32, #tpu.memory_space<vmem>>, vector<1x16xf32>
    %15 = vector.broadcast %14 : vector<1x16xf32> to vector<8x16xf32>
    %16 = arith.addf %13, %15 : vector<8x16xf32>
    %c0_16 = arith.constant 0 : index
    %c0_17 = arith.constant 0 : index
    %c0_18 = arith.constant 0 : index
    %17 = vector.load %arg9[%c0_16, %c0_17, %c0_18] : memref<1x8x16xf32, #tpu.memory_space<vmem>>, vector<1x8x16xf32>
    %18 = vector.shape_cast %17 : vector<1x8x16xf32> to vector<8x16xf32>
    %19 = vector.shape_cast %6 : vector<8x16xf32> to vector<1x8x16xf32>
    tpu.vector_store %arg9[%c0_16, %c0_17, %c0_18], %19 {strides = array<i32>} : memref<1x8x16xf32, #tpu.memory_space<vmem>>, vector<1x8x16xf32>,
    %c0_19 = arith.constant 0 : index
    %c0_20 = arith.constant 0 : index
    %c0_21 = arith.constant 0 : index
    %20 = vector.load %arg10[%c0_19, %c0_20, %c0_21] : memref<1x8x16xf32, #tpu.memory_space<vmem>>, vector<1x8x16xf32>
    %21 = vector.shape_cast %20 : vector<1x8x16xf32> to vector<8x16xf32>
    %22 = vector.shape_cast %11 : vector<8x16xf32> to vector<1x8x16xf32>
    tpu.vector_store %arg10[%c0_19, %c0_20, %c0_21], %22 {strides = array<i32>} : memref<1x8x16xf32, #tpu.memory_space<vmem>>, vector<1x8x16xf32>,
    %c0_22 = arith.constant 0 : index
    %c0_23 = arith.constant 0 : index
    %c0_24 = arith.constant 0 : index
    %23 = vector.load %arg11[%c0_22, %c0_23, %c0_24] : memref<1x8x16xf32, #tpu.memory_space<vmem>>, vector<1x8x16xf32>
    %24 = vector.shape_cast %23 : vector<1x8x16xf32> to vector<8x16xf32>
    %25 = vector.shape_cast %16 : vector<8x16xf32> to vector<1x8x16xf32>
    tpu.vector_store %arg11[%c0_22, %c0_23, %c0_24], %25 {strides = array<i32>} : memref<1x8x16xf32, #tpu.memory_space<vmem>>, vector<1x8x16xf32>,
    return
  }
  func.func @transform_0(%arg0: i32, %arg1: i32) -> (i32, i32, i32) {
    %c0_i32 = arith.constant 0 : i32
    %c0_i32_0 = arith.constant 0 : i32
    return %arg0, %arg1, %c0_i32 : i32, i32, i32
  }
  func.func @transform_1(%arg0: i32, %arg1: i32) -> (i32, i32) {
    %c0_i32 = arith.constant 0 : i32
    %c0_i32_0 = arith.constant 0 : i32
    %c0_i32_1 = arith.constant 0 : i32
    return %c0_i32, %c0_i32_0 : i32, i32
  }
  func.func @transform_2(%arg0: i32, %arg1: i32) -> (i32, i32) {
    %c0_i32 = arith.constant 0 : i32
    %c0_i32_0 = arith.constant 0 : i32
    %c0_i32_1 = arith.constant 0 : i32
    return %c0_i32, %c0_i32_0 : i32, i32
  }
  func.func @transform_3(%arg0: i32, %arg1: i32) -> (i32, i32) {
    %c0_i32 = arith.constant 0 : i32
    %c0_i32_0 = arith.constant 0 : i32
    %c0_i32_1 = arith.constant 0 : i32
    return %c0_i32, %c0_i32_0 : i32, i32
  }
  func.func @transform_4(%arg0: i32, %arg1: i32) -> (i32, i32) {
    %c0_i32 = arith.constant 0 : i32
    %c0_i32_0 = arith.constant 0 : i32
    %c0_i32_1 = arith.constant 0 : i32
    return %c0_i32, %c0_i32_0 : i32, i32
  }
  func.func @transform_5(%arg0: i32, %arg1: i32) -> (i32, i32) {
    %c0_i32 = arith.constant 0 : i32
    %c0_i32_0 = arith.constant 0 : i32
    %c0_i32_1 = arith.constant 0 : i32
    return %c0_i32, %c0_i32_0 : i32, i32
  }
  func.func @transform_6(%arg0: i32, %arg1: i32) -> (i32, i32) {
    %c0_i32 = arith.constant 0 : i32
    %c0_i32_0 = arith.constant 0 : i32
    %c0_i32_1 = arith.constant 0 : i32
    return %c0_i32, %c0_i32_0 : i32, i32
  }
  func.func @transform_7(%arg0: i32, %arg1: i32) -> (i32, i32, i32) {
    %c0_i32 = arith.constant 0 : i32
    %c0_i32_0 = arith.constant 0 : i32
    return %arg0, %arg1, %c0_i32 : i32, i32, i32
  }
  func.func @transform_8(%arg0: i32, %arg1: i32) -> (i32, i32, i32) {
    %c0_i32 = arith.constant 0 : i32
    %c0_i32_0 = arith.constant 0 : i32
    return %arg0, %arg1, %c0_i32 : i32, i32, i32
  }
  func.func @transform_9(%arg0: i32, %arg1: i32) -> (i32, i32, i32) {
    %c0_i32 = arith.constant 0 : i32
    %c0_i32_0 = arith.constant 0 : i32
    return %arg0, %arg1, %c0_i32 : i32, i32, i32
  }
}

</mosaic_0001>

<bundles_post_ra>
// kernel: tpu_custom_call.1
= control target key start
LH: loop header
LB: loop body
LE: loop exit
PB: predicated region body
PF: predicated region fallthrough
CT: control target
= control target key end

     0   :  { %s1166_s0 = inlined_call_operand.vmem [shape: f32[2,8,32], index: 0, kind: input, shape index: {}]   ;;  %s1167_s1 = inlined_call_operand.vmem [shape: f32[32,16], index: 1, kind: input, shape index: {}]   ;;  %s1168_s2 = inlined_call_operand.vmem [shape: f32[1,16], index: 2, kind: input, shape index: {}]   ;;  %s1169_s3 = inlined_call_operand.vmem [shape: f32[32,16], index: 3, kind: input, shape index: {}]   ;;  %s1170_s4 = inlined_call_operand.vmem [shape: f32[1,16], index: 4, kind: input, shape index: {}]   ;;  %s1171_s5 = inlined_call_operand.vmem [shape: f32[32,16], index: 5, kind: input, shape index: {}]   ;;  %s1172_s6 = inlined_call_operand.vmem [shape: f32[1,16], index: 6, kind: input, shape index: {}]   ;;  %s1173_s7 = inlined_call_operand.hbm [shape: f32[2,8,16], index: 7, kind: output, shape index: {0}]   ;;  %s1174_s8 = inlined_call_operand.hbm [shape: f32[2,8,16], index: 8, kind: output, shape index: {1}]   ;;  %s1175_s9 = inlined_call_operand.hbm [shape: f32[2,8,16], index: 9, kind: output, shape index: {2}]  }
   0x1   :  { %1184 = sst [smem:[#allocation11_spill]] %s1166_s0 }
   0x2   :  { %1185 = sst [smem:[#allocation12_spill]] %s1167_s1 }
   0x3   :  { %1186 = sst [smem:[#allocation13_spill]] %s1168_s2 }
   0x4   :  { %1187 = sst [smem:[#allocation14_spill]] %s1169_s3 }
   0x5   :  { %1188 = sst [smem:[#allocation15_spill]] %s1170_s4 }
   0x6   :  { %1189 = sst [smem:[#allocation16_spill]] %s1171_s5 }
   0x7   :  { %15 = vsyncpa [#allocation3], 0 }
   0x8   :  { %17 = vsyncpa [#allocation3 + $0x1], 0 }
   0x9   :  { %18 = vsyncpa [#allocation5], 0 }
   0xa   :  { %20 = vsyncpa [#allocation5 + $0x1], 0  ;;  %s939_s30 = smov 0   ;;  %s941_s10 = smov 0  }
   0xb   :  { %s943_s11 = smov 0   ;;  %s945_s12 = smov 0  }
   0xc   :  { %s947_s13 = smov 0   ;;  %s949_s14 = smov 0  }
   0xd LB: > { %s1177_s15 = sadd.s32 4294967295, %s887_s14   ;;  %s1176_s16 = sadd.s32 4294967294, %s887_s14   ;;  %s887_s14 = sphi %s949_s14, %s26_s14   ;;  %s883_s13 = sphi %s947_s13, %s1214_s13   ;;  %s879_s12 = sphi %s945_s12, %s1213_s12   ;;  %s875_s11 = sphi %s943_s11, %s1212_s11   ;;  %s871_s10 = sphi %s941_s10, %s1211_s10   ;;  %s867_s30 = sphi %s939_s30, %s1210_s30  }
   0xe   : > { %s38_s17 = sadd.s32 1, %s883_s13  ;;  %s201_s18 = sadd.s32 1, %s875_s11 }
   0xf   : > { %p40_p0 = scmp.ge.s32.totalorder %s38_s17, 2  ;;  %p211_p1 = scmp.ne.s32.totalorder %s875_s11, %s871_s10 }
  0x10   : > { %p212_p2 = scmp.eq.s32.totalorder %s1177_s15, 1  ;;  %p217_p3 = scmp.ne.s32.totalorder %s871_s10, %s867_s30 }
  0x11   : > { %s1216_s17 = smov (%p40_p0, %s38_s17), 0  ;;  %p218_p5 = scmp.eq.s32.totalorder %s1176_s16, 1 }
  0x12   : > { %p981_p4 = por %p212_p2, %p211_p1  ;;  %s196_s20 = ssub.s32 %s883_s13, %s1216_s17 }
  0x13   : > { %p665_p6 = scmp.ge.s32.totalorder %s887_s14, 1  ;;  %p199_p7 = scmp.eq.s32.totalorder %s196_s20, 0 }
  0x14   : > { %p990_p8 = por %p218_p5, %p217_p3  ;;  %p320_p9 = scmp.lt.s32.totalorder %s887_s14, 3 }
  0x15   : > { %s996_s22 = scalar_select %p199_p7, %s875_s11, %s201_s18  }
  0x16   : > { %p321_p10 = pnand %p665_p6, %p320_p9 }
  0x18   : > { %324 = sbr.rel (%p321_p10) target bundleno = 206 (0xce), region = 48 }
  0x1d   : > { %s1192_s5 = sld [smem:[#allocation16_spill]]  ;;  %p368_p11 = scmp.lt.s32.totalorder %s879_s12, 1  ;;  %vm384_vm0 = vcmask 261120   ;;  %vm464_vm1 = vcmask 130048   ;;  %v748_v19 = vld [vmem:[%s1172_s6] ss:$0 sm:$0xff] }
  0x1e   : > { %s1193_s3 = sld [smem:[#allocation14_spill]]  ;;  %s1178_s18 = sand.u32 1, %s871_s10  }
  0x1f   : > { %s1194_s1 = sld [smem:[#allocation12_spill]]  ;;  %s1042_s16 = sshll.u32 %s1178_s18, 3 }
  0x20   : > { %s369_s25 = scalar_select %p368_p11, %s879_s12, 1 }
  0x21   : > { %s1195_s0 = sld [smem:[#allocation11_spill]]  ;;  %s676_s20 = sshll.u32 %s879_s12, 3 }
  0x22   : > { %s669_s23 = sshll.u32 %s369_s25, 3  ;;  %s505_s27 = scalar_lea.hbm %s1174_s8, %s676_s20 }
  0x23   : > { %v439_v0 = vld [vmem:[%s1192_s5 + $0x18] sm:$0xff]  ;;  %v438_v1 = vld [vmem:[%s1192_s5 + $0x10] sm:$0xff]  ;;  %v437_v4 = vld [vmem:[%s1192_s5 + $0x8] sm:$0xff]  ;;  %s490_s25 = scalar_lea.hbm %s1173_s7, %s676_s20  ;;  %s1197_s4 = sld [smem:[#allocation15_spill]] }
  0x24   : > { %456 = vmatpush.msra.mxu2 %v439_v0  ;;  %v411_v2 = vld [vmem:[%s1193_s3 + $0x18] sm:$0xff]  ;;  %v410_v5 = vld [vmem:[%s1193_s3 + $0x10] sm:$0xff]  ;;  %v409_v7 = vld [vmem:[%s1193_s3 + $0x8] sm:$0xff]  ;;  %s360_s18 = scalar_lea.vmem [#allocation4], %s1042_s16  ;;  %s1198_s2 = sld [smem:[#allocation13_spill]] }
  0x25   : > { %v379_v3 = vld [vmem:[%s1194_s1 + $0x18] sm:$0xff]  ;;  %428 = vmatpush.msra.mxu1 %v411_v2  ;;  %v378_v6 = vld [vmem:[%s1194_s1 + $0x10] sm:$0xff]  ;;  %v377_v8 = vld [vmem:[%s1194_s1 + $0x8] sm:$0xff]  ;;  %s1179_s24 = scalar_lea.vmem [#allocation2], %s1042_s16 }
  0x26   : > { %400 = vmatpush.msra.mxu0 %v379_v3  ;;  %457 = vmatpush.msra.mxu2 %v438_v1  ;;  %v436_v9 = vld [vmem:[%s1192_s5] sm:$0xff] }
  0x27   : > { %429 = vmatpush.msra.mxu1 %v410_v5  ;;  %s374_s26 = scalar_lea.vmem %s1195_s0, %s669_s23  ;;  %v408_v10 = vld [vmem:[%s1193_s3] sm:$0xff]  ;;  %s1196_s23 = sadd.s32 4294967295, %s887_s14  }
  0x28   : > { %401 = vmatpush.msra.mxu0 %v378_v6  ;;  %458 = vmatpush.msra.mxu2 %v437_v4  ;;  %v375_v11 = vld [vmem:[%s374_s26] sm:$0xff]  ;;  %s1047_s15 = sand.u32 1, %s1196_s23   ;;  %s1059_s3 = sshll.u32 %s360_s18, 4  ;;  %s508_s3 = int_to_ptr.vmem [resolvable:$true] %s1059_s3 }
  0x29   : > { %430 = vmatpush.msra.mxu1 %v409_v7  ;;  %v376_v12 = vld [vmem:[%s1194_s1] sm:$0xff]  ;;  %s1064_s23 = sshll.u32 %s505_s27, 4  ;;  %s1069_s26 = sshll.u32 %s1179_s24, 4  ;;  %s510_s23 = int_to_ptr.hbm [resolvable:$true] %s1064_s23 }
  0x2a   : > { %402 = vmatpush.msra.mxu0 %v377_v8  ;;  %459 = vmatpush.msra.mxu2 %v436_v9  ;;  %v746_v13 = vld [vmem:[%s1197_s4] ss:$0 sm:$0xff]  ;;  %1199 = sst [smem:[#allocation9_spill]] %s1069_s26  ;;  %s1071_s0 = sshll.u32 %s490_s25, 4 }
  0x2b   : > { %672 = vmatmul.msk.f32.vlgmr.msra.gmra.mxu2 %vm384_vm0, %v375_v11  ;;  %431 = vmatpush.msra.mxu1 %v408_v10  ;;  %v747_v14 = vld [vmem:[%s1198_s2] ss:$0 sm:$0xff]  ;;  %1200 = sst [smem:[#allocation10_spill]] %s1071_s0  ;;  %s520_s27 = scalar_lea.hbm %s1175_s9, %s676_s20 }
  0x2c   : > { %403 = vmatpush.msra.mxu0 %v376_v12  ;;  %671 = vmatmul.msk.f32.vlgmr.msra.gmra.mxu1 %vm384_vm0, %v375_v11  ;;  %s1183_s25 = scalar_lea.vmem [#allocation6], %s1042_s16  ;;  %s1089_s24 = sshll.u32 %s520_s27, 4  ;;  %s525_s24 = int_to_ptr.hbm [resolvable:$true] %s1089_s24 }
  0x2d   : > { %670 = vmatmul.msk.f32.vlgmr.msra.gmra.mxu0 %vm384_vm0, %v375_v11  ;;  %s1087_s12 = sshll.u32 %s1183_s25, 4  ;;  %s474_s20 = scalar_lea.sflag [#allocation5], %s1047_s15  ;;  %s523_s12 = int_to_ptr.vmem [resolvable:$true] %s1087_s12 }
  0x2e   : > { %s763_s1 = sshra.s32 %s510_s23, 4  ;;  %s769_s26 = scalar_lea.hbm %s1174_s8, 16  ;;  %s764_s1 = int_to_ptr.hbm [resolvable:$true] %s763_s1 }
  0x2f   : > { %s765_s5 = scalar_lea.hbm %s764_s1, 8  ;;  %p770_p1 = scmp.lt.s32.totalorder %s764_s1, %s1174_s8 }
  0x30   : > { %p766_p12 = scmp.ne.s32.totalorder %s764_s1, %s765_s5  ;;  %p771_p2 = scmp.lt.s32.totalorder %s769_s26, %s765_s5 }
  0x32   : > { %p767_p13 = pnand %p766_p12, %p981_p4  ;;  %p772_p3 = por %p771_p2, %p770_p1 }
  0x34   : > { %p768_p0 = pneg %p767_p13 }
  0x36   : > { %p773_p5 = pnand %p772_p3, %p768_p0 }
  0xa9   : > { %v433_v15 = vpop.f32.mrf.mxu1 }
  0xaa   : > { %v434_v16 = vadd.f32 %v746_v13, %v433_v15  ;;  %v405_v17 = vpop.f32.mrf.mxu0 }
  0xab   : > { %v406_v18 = vadd.f32 %v747_v14, %v405_v17 }
  0xac   : > { %466 = vst.msk [vmem:[%s360_s18] sm:$0xff] %vm464_vm1, %v434_v16 }
  0xad   : > { %776 = shalt.err (!%p773_p5)
}
  0xae   : > { %s1201_s27 = sld [smem:[#allocation10_spill]]  ;;  %s1202_s28 = scalar_lea.vmem [#allocation2], %s1042_s16  ;;  %v461_v20 = vpop.f32.mrf.mxu2 }
  0xaf   : > { %682 = dma.vmem_to_hbm [thread:$0]  (%p981_p4), %s508_s3, 128, %s510_s23, %s474_s20   ;;  %465 = vst.msk [vmem:[%s1202_s28] sm:$0xff] %vm464_vm1, %v406_v18 }
  0xb0   : > { %s1203_s29 = sand.u32 1, %s871_s10   ;;  %s797_s2 = scalar_lea.hbm %s1173_s7, 16 }
  0xb1   : > { %s469_s0 = scalar_lea.sflag [#allocation3], %s1203_s29 }
  0xb4   : > { %s1204_s1 = int_to_ptr.hbm [resolvable:$true] %s1201_s27 }
  0xb5   : > { %s791_s26 = sshra.s32 %s1204_s1, 4  ;;  %s792_s26 = int_to_ptr.hbm [resolvable:$true] %s791_s26 }
  0xb6   : > { %s793_s5 = scalar_lea.hbm %s792_s26, 8  ;;  %p798_p10 = scmp.lt.s32.totalorder %s792_s26, %s1173_s7 }
  0xb7   : > { %p794_p6 = scmp.ne.s32.totalorder %s792_s26, %s793_s5  ;;  %p799_p11 = scmp.lt.s32.totalorder %s797_s2, %s793_s5 }
  0xb9   : > { %p795_p7 = pnand %p794_p6, %p981_p4  ;;  %p800_p12 = por %p799_p11, %p798_p10 }
  0xbb   : > { %p796_p9 = pneg %p795_p7 }
  0xbd   : > { %p801_p13 = pnand %p800_p12, %p796_p9 }
  0xbf   : > { %804 = shalt.err (!%p801_p13)
}
  0xc0   : > { %s1205_s23 = smov %s1204_s1  ;;  %s1206_s28 = sld [smem:[#allocation9_spill]]  ;;  %v462_v21 = vadd.f32 %v748_v19, %v461_v20 }
  0xc1   : > { %s1208_s4 = scalar_lea.vmem [#allocation6], %s1042_s16  ;;  %s819_s2 = sshra.s32 %s525_s24, 4  ;;  %s820_s2 = int_to_ptr.hbm [resolvable:$true] %s819_s2 }
  0xc2   : > { %467 = vst.msk [vmem:[%s1208_s4] sm:$0xff] %vm464_vm1, %v462_v21  ;;  %s821_s25 = scalar_lea.hbm %s820_s2, 8  ;;  %s825_s26 = scalar_lea.hbm %s1175_s9, 16 }
  0xc3   : > { %p822_p0 = scmp.ne.s32.totalorder %s820_s2, %s821_s25  ;;  %p826_p3 = scmp.lt.s32.totalorder %s820_s2, %s1175_s9 }
  0xc4   : > { %p827_p5 = scmp.lt.s32.totalorder %s825_s26, %s821_s25 }
  0xc5   : > { %p823_p1 = pnand %p822_p0, %p981_p4 }
  0xc6   : > { %s1207_s29 = int_to_ptr.vmem [resolvable:$true] %s1206_s28  ;;  %p828_p6 = por %p827_p5, %p826_p3 }
  0xc7   : > { %681 = dma.vmem_to_hbm [thread:$0]  (%p981_p4), %s1207_s29, 128, %s1205_s23, %s469_s0  }
  0xc8   : > { %p824_p2 = pneg %p823_p1 }
  0xca   : > { %p829_p7 = pnand %p828_p6, %p824_p2 }
  0xcc   : > { %832 = shalt.err (!%p829_p7)
}
  0xcd   : > { %683 = dma.vmem_to_hbm [thread:$0]  (%p981_p4), %s523_s12, 128, %s525_s24, %s474_s20  }
  0xce PF: > { %p697_p9 = scmp.ge.s32.totalorder %s887_s14, 2  ;;  %s536_s16 = sand.u32 1, %s867_s30  }
  0xcf   : > { %s537_s0 = scalar_lea.sflag [#allocation3], %s536_s16 }
  0xd0   : > { %p688_p10 = pnand %p697_p9, %p990_p8 }
  0xd2   : > { %p689_p11 = pneg %p688_p10 }
  0xd4   : > { %858 = dma.done.wait (%p689_p11), %s537_s0, 128  }
  0xd5   : > { %860 = vsyncadd (%p689_p11), %s537_s0, 4294967168  ;;  %s1209_s3 = sadd.s32 4294967294, %s887_s14  }
  0xd6   : > { %s546_s23 = sand.u32 1, %s1209_s3  }
  0xd7   : > { %s547_s28 = scalar_lea.sflag [#allocation5], %s546_s23 }
  0xd8   : > { %862 = dma.done.wait (%p689_p11), %s547_s28, 256  }
  0xd9   : > { %864 = vsyncadd (%p689_p11), %s547_s28, 4294967040  ;;  %s26_s14 = sadd.s32 1, %s887_s14   ;;  %s1210_s30 = smov %s871_s10 }
  0xda   : > { %p23_p4 = scmp.ge.s32.totalorder %s26_s14, 4   ;;  %s1211_s10 = smov %s875_s11 }
  0xdb   : > { %s1212_s11 = smov %s996_s22  ;;  %s1213_s12 = smov %s883_s13 }
  0xdc   : > { %s1214_s13 = smov %s1216_s17  ;;  %25 = sbr.rel (!%p23_p4) target bundleno = 13 (0xd), region = 115 }
  0xe1   :  { %563 = vsyncpa [#allocation3], 1 }
  0xe2   :  { %565 = vsyncpa [#allocation3 + $0x1], 1 }
  0xe3   :  { %566 = vsyncpa [#allocation5], 1 }
  0xe4   :  { %568 = vsyncpa [#allocation5 + $0x1], 1 }

</bundles_post_ra>
